<compile_context>
chip_gen: v7x
topology: tpu7x:2x2x1
jax: 0.10.0
libtpu: 0.0.40
codegen_flags: <defaults>
</compile_context>

<pallas_src>
import numpy as np
import jax
import jax.numpy as jnp
from jax import lax
from jax.experimental import pallas as pl
from jax.experimental.pallas import tpu as pltpu

_BN_EPS = 1e-5
_NEG_BIG = -1e30          # finite "-inf"; safe only while logits stay f32
_SOFTMAX_PAD = 128        # lane-dense padded class dim (real classes = 3)
_OUT_W = 8                # narrow pass-2 output width (cols 0..2 are real)
_CONV_CMAX = 16           # widest conv channel count
_CONV_PADMAX = 2          # widest conv half-kernel ((5 - 1) // 2)

_AA_CHARGES = {'D': -1.0, 'E': -1.0, 'K': 1.0, 'R': 1.0, 'H': 0.1,
               'A': 0, 'C': 0, 'F': 0, 'G': 0, 'I': 0, 'L': 0, 'M': 0,
               'N': 0, 'P': 0, 'Q': 0, 'S': 0, 'T': 0, 'V': 0, 'W': 0, 'Y': 0}


def _round_up(x, m):
    return ((x + m - 1) // m) * m


def _rep_spec(shape):
    """Full-array block, same block for every step of a 1-D grid."""
    n = len(shape)
    return pl.BlockSpec(shape, lambda i, _n=n: (0,) * _n)


# --------------------------------------------------------------------------
# Pallas kernels
# --------------------------------------------------------------------------
def _make_hidden_stats_kernel(n_valid, tile_n, needs_mask):
    """Pass 1: h1 = ReLU(x @ W1 + b1) per tile (stored bf16) + partial BN sums."""
    def kernel(x_ref, w1_ref, b1_ref, h1_ref, stats_ref):
        h1 = jnp.dot(x_ref[...].astype(jnp.bfloat16), w1_ref[...],
                     preferred_element_type=jnp.float32) + b1_ref[...]
        h1 = jnp.maximum(h1, 0.0)
        h1_ref[...] = h1.astype(h1_ref.dtype)          # bf16 store (half traffic)

        def write_stats(hv):
            s = jnp.concatenate(
                [jnp.sum(hv, axis=0, keepdims=True),
                 jnp.sum(hv * hv, axis=0, keepdims=True)], axis=0)   # [2, H]
            stats_ref[...] = s[None]                    # single (1,2,H) store

        if needs_mask:
            i = pl.program_id(0)
            is_last = i == pl.num_programs(0) - 1

            @pl.when(jnp.logical_not(is_last))
            def _():
                write_stats(h1)

            @pl.when(is_last)
            def _():
                # Only the last tile contains zero-padded rows.
                row = lax.broadcasted_iota(jnp.int32, h1.shape, 0) + i * tile_n
                write_stats(jnp.where(row < n_valid, h1, 0.0))
        else:
            write_stats(h1)
    return kernel


def _mlp_head_kernel(h1_ref, w2_ref, b2_ref, w3_ref, b3_ref, out_ref):
    """Pass 2: (BN folded into w2/b2) Linear -> ReLU -> Linear(128-padded)
    -> exact softmax; write only the narrow 8-column slab (3 real classes)."""
    h2 = jnp.dot(h1_ref[...], w2_ref[...],
                 preferred_element_type=jnp.float32) + b2_ref[...]
    h2 = jnp.maximum(h2, 0.0)
    # w3/b3 are padded to 128 columns; padded columns carry bias -1e30 so
    # their softmax weight underflows to exactly 0 (logits stay f32).
    logits = jnp.dot(h2.astype(jnp.bfloat16), w3_ref[...],
                     preferred_element_type=jnp.float32) + b3_ref[...]
    m = jnp.max(logits, axis=-1, keepdims=True)
    e = jnp.exp(logits - m)
    probs = e * pl.reciprocal(jnp.sum(e, axis=-1, keepdims=True), approx=False)
    out_ref[...] = probs[:, 0:_OUT_W]


def _conv1d_same_batched(x, w_ref, b_ref, pad_ref):
    """Same-padded Conv1d over axis 1 of x, batched over axis 0.

    x: [TB, S, Cin] f32; w_ref: [K, Cin, Cout]; b_ref: [1, Cout];
    pad_ref: VMEM scratch [TB, S + 2*_CONV_PADMAX, _CONV_CMAX] whose halo rows
    are already zero (interior is overwritten here).
    """
    tb, S, c_in = x.shape
    K = w_ref.shape[0]
    c_out = w_ref.shape[2]
    pad = (K - 1) // 2
    pad_ref[:, _CONV_PADMAX:_CONV_PADMAX + S, 0:c_in] = x
    y = jnp.broadcast_to(b_ref[...].reshape(1, 1, c_out),
                         (tb, S, c_out)).astype(jnp.float32)
    for k in range(K):
        start = _CONV_PADMAX - pad + k
        xk = pad_ref[:, start:start + S, 0:c_in]        # x[s + k - pad], 0 in halo
        wk = w_ref[k]                                   # [Cin, Cout]
        if c_in == 1:
            y = y + xk * wk.reshape(1, 1, c_out)        # pure VPU broadcast MAC
        else:
            yk = jnp.dot(xk.reshape(tb * S, c_in), wk,
                         preferred_element_type=jnp.float32)
            y = y + yk.reshape(tb, S, c_out)
    return y


def _potential_kernel(pc_ref, w1_ref, b1_ref, w2_ref, b2_ref, w3_ref, b3_ref,
                      net_ref, pot_ref, pad_ref):
    """net_charge = p_pos - p_neg, then the 3-layer Conv1d stack, channels-last,
    TILE_B sequences per grid step."""
    pc = pc_ref[...]                                    # [TB, S, 3]
    tb, S, _ = pc.shape
    net = pc[:, :, 0:1] - pc[:, :, 1:2]                 # [TB, S, 1]
    net_ref[...] = net
    # Zero only the halo rows once; every conv rewrites the interior.
    halo = jnp.zeros((tb, _CONV_PADMAX, _CONV_CMAX), jnp.float32)
    pad_ref[:, 0:_CONV_PADMAX, :] = halo
    pad_ref[:, _CONV_PADMAX + S:_CONV_PADMAX + S + _CONV_PADMAX, :] = halo
    h = jnp.maximum(_conv1d_same_batched(net, w1_ref, b1_ref, pad_ref), 0.0)
    h = jnp.maximum(_conv1d_same_batched(h, w2_ref, b2_ref, pad_ref), 0.0)
    pot_ref[...] = _conv1d_same_batched(h, w3_ref, b3_ref, pad_ref)


# --------------------------------------------------------------------------
# pallas_call wrappers
# --------------------------------------------------------------------------
def _choose_tile(n, f, h, *, vmem_budget=40 * 1024 * 1024, max_tile=2048):
    """Pass-1 tile sized against a conservative VMEM budget (fits v7x 64 MiB)."""
    per_row = 2 * (f * 4 + h * 2)          # double-buffered f32 x in + bf16 h1 out
    weights = f * h * 2 + 8 * h * 4
    avail = max(vmem_budget - weights, 1 << 20)
    t = int(min(max(avail // max(per_row, 1), 16), max_tile))
    t = max((t // 16) * 16, 16)            # multiple of 16 (bf16 sublane packing)
    return min(t, _round_up(n, 16))


def _run_charge_predictor(x_flat, p, *, tile_n=None):
    n, f = x_flat.shape
    h = p["w1"].shape[1]
    h2 = p["w2"].shape[1]
    tile = tile_n if tile_n is not None else _choose_tile(n, f, h)
    n_pad = _round_up(n, tile)
    num_tiles = n_pad // tile
    if n_pad != n:
        x_flat = jnp.pad(x_flat, ((0, n_pad - n), (0, 0)))

    cparams = pltpu.CompilerParams(dimension_semantics=("parallel",),
                                   vmem_limit_bytes=48 * 1024 * 1024)

    # Pre-cast replicated matmul weights once (no per-step VPU re-casts, half
    # the resident weight footprint).  Biases stay f32.
    w1b = p["w1"].astype(jnp.bfloat16)

    # ---- pass 1: bf16 hidden activation + per-tile partial BN sums ---------
    h1, stats = pl.pallas_call(
        _make_hidden_stats_kernel(n, tile, n_pad != n),
        grid=(num_tiles,),
        in_specs=[pl.BlockSpec((tile, f), lambda i: (i, 0)),
                  _rep_spec(w1b.shape), _rep_spec(p["b1"].shape)],
        out_specs=[pl.BlockSpec((tile, h), lambda i: (i, 0)),
                   pl.BlockSpec((1, 2, h), lambda i: (i, 0, 0))],
        out_shape=(jax.ShapeDtypeStruct((n_pad, h), jnp.bfloat16),
                   jax.ShapeDtypeStruct((num_tiles, 2, h), jnp.float32)),
        compiler_params=cparams,
    )(x_flat, w1b, p["b1"])

    # ---- global BatchNorm1d training statistics (tiny O(H) wrapper math) ---
    tot = jnp.sum(stats, axis=0)                            # [2, H]
    mean = tot[0:1] / n
    var = jnp.maximum(tot[1:2] / n - mean * mean, 0.0)      # biased (PyTorch)
    scale = p["gamma"] * lax.rsqrt(var + _BN_EPS)           # [1, H]
    shift = p["beta"] - mean * scale                        # [1, H]

    # ---- fold BN affine into w2/b2; pad final linear to 128 lanes ----------
    w2f = (p["w2"] * scale.reshape(-1, 1)).astype(jnp.bfloat16)     # [H, H2]
    b2f = p["b2"] + shift @ p["w2"]                                 # [1, H2] f32
    w3p = jnp.pad(p["w3"], ((0, 0), (0, _SOFTMAX_PAD - p["w3"].shape[1]))
                  ).astype(jnp.bfloat16)
    b3p = jnp.pad(p["b3"], ((0, 0), (0, _SOFTMAX_PAD - p["b3"].shape[1])),
                  constant_values=_NEG_BIG)                         # f32

    # ---- pass 2: MLP head + softmax, narrow (tile, 8) output ---------------
    probs = pl.pallas_call(
        _mlp_head_kernel,
        grid=(num_tiles,),
        in_specs=[pl.BlockSpec((tile, h), lambda i: (i, 0)),
                  _rep_spec(w2f.shape), _rep_spec(b2f.shape),
                  _rep_spec((h2, _SOFTMAX_PAD)), _rep_spec((1, _SOFTMAX_PAD))],
        out_specs=pl.BlockSpec((tile, _OUT_W), lambda i: (i, 0)),
        out_shape=jax.ShapeDtypeStruct((n_pad, _OUT_W), jnp.float32),
        compiler_params=cparams,
    )(h1, w2f, b2f, w3p, b3p)

    return probs[:n, :3]


def _run_potential(pred_charges, p, *, tile_b_max=8):
    B, S, _ = pred_charges.shape
    # >=2 grid steps whenever B >= 2 so both v7x TensorCores get work.
    tb = max(1, min(tile_b_max, -(-B // 2)))
    b_pad = _round_up(B, tb)
    if b_pad != B:
        pred_charges = jnp.pad(pred_charges, ((0, b_pad - B), (0, 0), (0, 0)))
    num = b_pad // tb

    net, pot = pl.pallas_call(
        _potential_kernel,
        grid=(num,),
        in_specs=[pl.BlockSpec((tb, S, 3), lambda b: (b, 0, 0)),
                  _rep_spec(p["cw1"].shape), _rep_spec(p["cb1"].shape),
                  _rep_spec(p["cw2"].shape), _rep_spec(p["cb2"].shape),
                  _rep_spec(p["cw3"].shape), _rep_spec(p["cb3"].shape)],
        out_specs=[pl.BlockSpec((tb, S, 1), lambda b: (b, 0, 0)),
                   pl.BlockSpec((tb, S, 1), lambda b: (b, 0, 0))],
        out_shape=(jax.ShapeDtypeStruct((b_pad, S, 1), jnp.float32),
                   jax.ShapeDtypeStruct((b_pad, S, 1), jnp.float32)),
        scratch_shapes=[pltpu.VMEM((tb, S + 2 * _CONV_PADMAX, _CONV_CMAX),
                                   jnp.float32)],
        compiler_params=pltpu.CompilerParams(dimension_semantics=("parallel",)),
    )(pred_charges, p["cw1"], p["cb1"], p["cw2"], p["cb2"], p["cw3"], p["cb3"])
    return net[:B], pot[:B]


# --------------------------------------------------------------------------
# Parameter init (deterministic, synthetic)
# --------------------------------------------------------------------------
def init_params(key, feature_dim, hidden_dim=128):
    h2 = hidden_dim // 2
    ks = jax.random.split(key, 6)

    def lin(k, fi, fo):
        kw, kb = jax.random.split(k)
        bound = 1.0 / np.sqrt(fi)
        w = jax.random.uniform(kw, (fi, fo), jnp.float32, -bound, bound)
        b = jax.random.uniform(kb, (1, fo), jnp.float32, -bound, bound)
        return w, b

    def conv(k, co, ci, ksz):
        kw, kb = jax.random.split(k)
        bound = 1.0 / np.sqrt(ci * ksz)
        # pre-transposed to [K, Cin, Cout] so the kernel never relayouts
        w = jax.random.uniform(kw, (ksz, ci, co), jnp.float32, -bound, bound)
        b = jax.random.uniform(kb, (1, co), jnp.float32, -bound, bound)
        return w, b

    p = {}
    p["w1"], p["b1"] = lin(ks[0], feature_dim, hidden_dim)
    p["gamma"] = jnp.ones((1, hidden_dim), jnp.float32)
    p["beta"] = jnp.zeros((1, hidden_dim), jnp.float32)
    p["w2"], p["b2"] = lin(ks[1], hidden_dim, h2)
    p["w3"], p["b3"] = lin(ks[2], h2, 3)
    p["cw1"], p["cb1"] = conv(ks[3], 16, 1, 5)
    p["cw2"], p["cb2"] = conv(ks[4], 8, 16, 3)
    p["cw3"], p["cb3"] = conv(ks[5], 1, 8, 3)
    return p


# --------------------------------------------------------------------------
# Host-side glue (string handling) + forward
# --------------------------------------------------------------------------
def compute_true_charges(sequences):
    bs = len(sequences)
    max_len = max(len(s) for s in sequences)
    charges = np.zeros((bs, max_len, 3), np.float32)
    for i, seq in enumerate(sequences):
        for j, aa in enumerate(seq):
            if aa in _AA_CHARGES:
                c = _AA_CHARGES[aa]
                if c > 0:
                    charges[i, j, 0] = 1
                elif c < 0:
                    charges[i, j, 1] = 1
                else:
                    charges[i, j, 2] = 1
    return jnp.asarray(charges)


@jax.jit
def _forward_arrays(features, params):
    B, S, F = features.shape
    pred_flat = _run_charge_predictor(features.reshape(B * S, F), params)
    predicted_charges = pred_flat.reshape(B, S, 3)
    net_charge, potential = _run_potential(predicted_charges, params)
    return predicted_charges, net_charge, potential


def electrostatic_analyzer_forward(features, sequences, params):
    """features: [B, S, feature_dim] float32."""
    true_charges = compute_true_charges(sequences)
    predicted_charges, net_charge, potential = _forward_arrays(features, params)
    # TODO(synk): salt-bridge detection, pairwise electrostatic energy and the
    # dipole helper (the `structures is not None` branch) use data-dependent
    # Python loops and .item() calls with no clean Pallas equivalent; this
    # implements the structures=None forward path.
    return {
        "predicted_charges": predicted_charges,
        "true_charges": true_charges,
        "net_charge": net_charge,
        "electrostatic_potential": potential,
    }


if __name__ == "__main__":
    key = jax.random.PRNGKey(0)
    k_feat, k_par = jax.random.split(key)
    B, S, F = 2, 8, 32
    features = jax.random.normal(k_feat, (B, S, F), jnp.float32)
    sequences = ["DEKRHACF", "GILMNPQS"]
    params = init_params(k_par, F, hidden_dim=128)

    out = electrostatic_analyzer_forward(features, sequences, params)
    jax.block_until_ready(out)

    assert out["predicted_charges"].shape == (B, S, 3)
    assert out["true_charges"].shape == (B, S, 3)
    assert out["net_charge"].shape == (B, S, 1)
    assert out["electrostatic_potential"].shape == (B, S, 1)
    probs = np.asarray(out["predicted_charges"])
    assert np.all(probs >= 0.0)
    assert np.allclose(probs.sum(-1), 1.0, atol=1e-2)
    nc = np.asarray(out["net_charge"])
    assert np.allclose(nc[..., 0], probs[..., 0] - probs[..., 1], atol=1e-3)
    print("KERNEL_OK")
</pallas_src>

<mosaic_0001>
module attributes {stable_mosaic.version = 11 : i64} {
  func.func @kernel(%arg0: i32, %arg1: memref<16x32xf32, #tpu.memory_space<vmem>>, %arg2: memref<32x128xbf16, #tpu.memory_space<vmem>>, %arg3: memref<1x128xf32, #tpu.memory_space<vmem>>, %arg4: memref<16x128xbf16, #tpu.memory_space<vmem>>, %arg5: memref<1x2x128xf32, #tpu.memory_space<vmem>>) attributes {dimension_semantics = [#tpu.dimension_semantics<parallel>], iteration_bounds = array<i64: 1>, scalar_prefetch = 0 : i64, scratch_operands = 0 : i64, tpu.core_type = #tpu.core_type<tc>, window_params = [{transform_indices = @transform_0, window_bounds = array<i64: 16, 32>}, {pipeline_mode = #tpu.pipeline_mode<synchronous>, transform_indices = @transform_1, window_bounds = array<i64: 32, 128>}, {pipeline_mode = #tpu.pipeline_mode<synchronous>, transform_indices = @transform_2, window_bounds = array<i64: 1, 128>}, {transform_indices = @transform_3, window_bounds = array<i64: 16, 128>}, {transform_indices = @transform_4, window_bounds = array<i64: 1, 2, 128>}]} {
    %c0 = arith.constant 0 : index
    %c0_0 = arith.constant 0 : index
    %0 = vector.load %arg1[%c0, %c0_0] : memref<16x32xf32, #tpu.memory_space<vmem>>, vector<16x32xf32>
    %1 = arith.truncf %0 : vector<16x32xf32> to vector<16x32xbf16>
    %c0_1 = arith.constant 0 : index
    %c0_2 = arith.constant 0 : index
    %2 = vector.load %arg2[%c0_1, %c0_2] : memref<32x128xbf16, #tpu.memory_space<vmem>>, vector<32x128xbf16>
    %cst = arith.constant dense<0.000000e+00> : vector<16x128xf32>
    %3 = tpu.matmul %1, %2, %cst {dimension_numbers = #tpu.dot_dimension_numbers<[1], [0], [0], [1], [0, 0, 1, 1], [], []>} : vector<16x32xbf16>, vector<32x128xbf16>, vector<16x128xf32> -> vector<16x128xf32>
    %c0_3 = arith.constant 0 : index
    %c0_4 = arith.constant 0 : index
    %4 = vector.load %arg3[%c0_3, %c0_4] : memref<1x128xf32, #tpu.memory_space<vmem>>, vector<1x128xf32>
    %5 = vector.broadcast %4 : vector<1x128xf32> to vector<16x128xf32>
    %6 = arith.addf %3, %5 : vector<16x128xf32>
    %cst_5 = arith.constant 0.000000e+00 : f32
    %7 = vector.broadcast %cst_5 : f32 to vector<16x128xf32>
    %8 = arith.maximumf %6, %7 : vector<16x128xf32>
    %9 = arith.truncf %8 : vector<16x128xf32> to vector<16x128xbf16>
    %c0_6 = arith.constant 0 : index
    %c0_7 = arith.constant 0 : index
    %10 = vector.load %arg4[%c0_6, %c0_7] : memref<16x128xbf16, #tpu.memory_space<vmem>>, vector<16x128xbf16>
    tpu.vector_store %arg4[%c0_6, %c0_7], %9 {strides = array<i32>} : memref<16x128xbf16, #tpu.memory_space<vmem>>, vector<16x128xbf16>,
    %cst_8 = arith.constant dense<0.000000e+00> : vector<128xf32>
    %11 = vector.multi_reduction <add>, %8, %cst_8 [0] : vector<16x128xf32> to vector<128xf32>
    %12 = vector.shape_cast %11 : vector<128xf32> to vector<1x128xf32>
    %13 = arith.mulf %8, %8 : vector<16x128xf32>
    %cst_9 = arith.constant dense<0.000000e+00> : vector<128xf32>
    %14 = vector.multi_reduction <add>, %13, %cst_9 [0] : vector<16x128xf32> to vector<128xf32>
    %15 = vector.shape_cast %14 : vector<128xf32> to vector<1x128xf32>
    %16 = tpu.concatenate %12, %15 in 0 : vector<1x128xf32>, vector<1x128xf32> -> vector<2x128xf32>
    %17 = vector.shape_cast %16 : vector<2x128xf32> to vector<1x2x128xf32>
    %c0_10 = arith.constant 0 : index
    %c0_11 = arith.constant 0 : index
    %c0_12 = arith.constant 0 : index
    %18 = vector.load %arg5[%c0_10, %c0_11, %c0_12] : memref<1x2x128xf32, #tpu.memory_space<vmem>>, vector<1x2x128xf32>
    tpu.vector_store %arg5[%c0_10, %c0_11, %c0_12], %17 {strides = array<i32>} : memref<1x2x128xf32, #tpu.memory_space<vmem>>, vector<1x2x128xf32>,
    return
  }
  func.func @transform_0(%arg0: i32) -> (i32, i32) {
    %c0_i32 = arith.constant 0 : i32
    %c0_i32_0 = arith.constant 0 : i32
    return %arg0, %c0_i32 : i32, i32
  }
  func.func @transform_1(%arg0: i32) -> (i32, i32) {
    %c0_i32 = arith.constant 0 : i32
    %c0_i32_0 = arith.constant 0 : i32
    %c0_i32_1 = arith.constant 0 : i32
    return %c0_i32, %c0_i32_0 : i32, i32
  }
  func.func @transform_2(%arg0: i32) -> (i32, i32) {
    %c0_i32 = arith.constant 0 : i32
    %c0_i32_0 = arith.constant 0 : i32
    %c0_i32_1 = arith.constant 0 : i32
    return %c0_i32, %c0_i32_0 : i32, i32
  }
  func.func @transform_3(%arg0: i32) -> (i32, i32) {
    %c0_i32 = arith.constant 0 : i32
    %c0_i32_0 = arith.constant 0 : i32
    return %arg0, %c0_i32 : i32, i32
  }
  func.func @transform_4(%arg0: i32) -> (i32, i32, i32) {
    %c0_i32 = arith.constant 0 : i32
    %c0_i32_0 = arith.constant 0 : i32
    %c0_i32_1 = arith.constant 0 : i32
    return %arg0, %c0_i32, %c0_i32_0 : i32, i32, i32
  }
}

module attributes {stable_mosaic.version = 11 : i64} {
  func.func @_mlp_head_kernel(%arg0: i32, %arg1: memref<16x128xbf16, #tpu.memory_space<vmem>>, %arg2: memref<128x64xbf16, #tpu.memory_space<vmem>>, %arg3: memref<1x64xf32, #tpu.memory_space<vmem>>, %arg4: memref<64x128xbf16, #tpu.memory_space<vmem>>, %arg5: memref<1x128xf32, #tpu.memory_space<vmem>>, %arg6: memref<16x8xf32, #tpu.memory_space<vmem>>) attributes {dimension_semantics = [#tpu.dimension_semantics<parallel>], iteration_bounds = array<i64: 1>, scalar_prefetch = 0 : i64, scratch_operands = 0 : i64, tpu.core_type = #tpu.core_type<tc>, window_params = [{transform_indices = @transform_0, window_bounds = array<i64: 16, 128>}, {pipeline_mode = #tpu.pipeline_mode<synchronous>, transform_indices = @transform_1, window_bounds = array<i64: 128, 64>}, {pipeline_mode = #tpu.pipeline_mode<synchronous>, transform_indices = @transform_2, window_bounds = array<i64: 1, 64>}, {pipeline_mode = #tpu.pipeline_mode<synchronous>, transform_indices = @transform_3, window_bounds = array<i64: 64, 128>}, {pipeline_mode = #tpu.pipeline_mode<synchronous>, transform_indices = @transform_4, window_bounds = array<i64: 1, 128>}, {transform_indices = @transform_5, window_bounds = array<i64: 16, 8>}]} {
    %c0 = arith.constant 0 : index
    %c0_0 = arith.constant 0 : index
    %0 = vector.load %arg1[%c0, %c0_0] : memref<16x128xbf16, #tpu.memory_space<vmem>>, vector<16x128xbf16>
    %c0_1 = arith.constant 0 : index
    %c0_2 = arith.constant 0 : index
    %1 = vector.load %arg2[%c0_1, %c0_2] : memref<128x64xbf16, #tpu.memory_space<vmem>>, vector<128x64xbf16>
    %cst = arith.constant dense<0.000000e+00> : vector<16x64xf32>
    %2 = tpu.matmul %0, %1, %cst {dimension_numbers = #tpu.dot_dimension_numbers<[1], [0], [0], [1], [0, 0, 1, 1], [], []>} : vector<16x128xbf16>, vector<128x64xbf16>, vector<16x64xf32> -> vector<16x64xf32>
    %c0_3 = arith.constant 0 : index
    %c0_4 = arith.constant 0 : index
    %3 = vector.load %arg3[%c0_3, %c0_4] : memref<1x64xf32, #tpu.memory_space<vmem>>, vector<1x64xf32>
    %4 = vector.broadcast %3 : vector<1x64xf32> to vector<16x64xf32>
    %5 = arith.addf %2, %4 : vector<16x64xf32>
    %cst_5 = arith.constant 0.000000e+00 : f32
    %6 = vector.broadcast %cst_5 : f32 to vector<16x64xf32>
    %7 = arith.maximumf %5, %6 : vector<16x64xf32>
    %8 = arith.truncf %7 : vector<16x64xf32> to vector<16x64xbf16>
    %c0_6 = arith.constant 0 : index
    %c0_7 = arith.constant 0 : index
    %9 = vector.load %arg4[%c0_6, %c0_7] : memref<64x128xbf16, #tpu.memory_space<vmem>>, vector<64x128xbf16>
    %cst_8 = arith.constant dense<0.000000e+00> : vector<16x128xf32>
    %10 = tpu.matmul %8, %9, %cst_8 {dimension_numbers = #tpu.dot_dimension_numbers<[1], [0], [0], [1], [0, 0, 1, 1], [], []>} : vector<16x64xbf16>, vector<64x128xbf16>, vector<16x128xf32> -> vector<16x128xf32>
    %c0_9 = arith.constant 0 : index
    %c0_10 = arith.constant 0 : index
    %11 = vector.load %arg5[%c0_9, %c0_10] : memref<1x128xf32, #tpu.memory_space<vmem>>, vector<1x128xf32>
    %12 = vector.broadcast %11 : vector<1x128xf32> to vector<16x128xf32>
    %13 = arith.addf %10, %12 : vector<16x128xf32>
    %cst_11 = arith.constant dense<0xFF800000> : vector<16xf32>
    %14 = vector.multi_reduction <maximumf>, %13, %cst_11 [1] : vector<16x128xf32> to vector<16xf32>
    %15 = vector.shape_cast %14 : vector<16xf32> to vector<16x1xf32>
    %16 = vector.broadcast %15 : vector<16x1xf32> to vector<16x128xf32>
    %17 = arith.subf %13, %16 : vector<16x128xf32>
    %18 = math.exp %17 : vector<16x128xf32>
    %cst_12 = arith.constant dense<0.000000e+00> : vector<16xf32>
    %19 = vector.multi_reduction <add>, %18, %cst_12 [1] : vector<16x128xf32> to vector<16xf32>
    %20 = vector.shape_cast %19 : vector<16xf32> to vector<16x1xf32>
    %21 = tpu.reciprocal %20 : vector<16x1xf32> -> vector<16x1xf32>
    %22 = vector.broadcast %21 : vector<16x1xf32> to vector<16x128xf32>
    %23 = arith.mulf %18, %22 : vector<16x128xf32>
    %24 = vector.extract_strided_slice %23 {offsets = [0, 0], sizes = [16, 8], strides = [1, 1]} : vector<16x128xf32> to vector<16x8xf32>
    %c0_13 = arith.constant 0 : index
    %c0_14 = arith.constant 0 : index
    %25 = vector.load %arg6[%c0_13, %c0_14] : memref<16x8xf32, #tpu.memory_space<vmem>>, vector<16x8xf32>
    tpu.vector_store %arg6[%c0_13, %c0_14], %24 {strides = array<i32>} : memref<16x8xf32, #tpu.memory_space<vmem>>, vector<16x8xf32>,
    return
  }
  func.func @transform_0(%arg0: i32) -> (i32, i32) {
    %c0_i32 = arith.constant 0 : i32
    %c0_i32_0 = arith.constant 0 : i32
    return %arg0, %c0_i32 : i32, i32
  }
  func.func @transform_1(%arg0: i32) -> (i32, i32) {
    %c0_i32 = arith.constant 0 : i32
    %c0_i32_0 = arith.constant 0 : i32
    %c0_i32_1 = arith.constant 0 : i32
    return %c0_i32, %c0_i32_0 : i32, i32
  }
  func.func @transform_2(%arg0: i32) -> (i32, i32) {
    %c0_i32 = arith.constant 0 : i32
    %c0_i32_0 = arith.constant 0 : i32
    %c0_i32_1 = arith.constant 0 : i32
    return %c0_i32, %c0_i32_0 : i32, i32
  }
  func.func @transform_3(%arg0: i32) -> (i32, i32) {
    %c0_i32 = arith.constant 0 : i32
    %c0_i32_0 = arith.constant 0 : i32
    %c0_i32_1 = arith.constant 0 : i32
    return %c0_i32, %c0_i32_0 : i32, i32
  }
  func.func @transform_4(%arg0: i32) -> (i32, i32) {
    %c0_i32 = arith.constant 0 : i32
    %c0_i32_0 = arith.constant 0 : i32
    %c0_i32_1 = arith.constant 0 : i32
    return %c0_i32, %c0_i32_0 : i32, i32
  }
  func.func @transform_5(%arg0: i32) -> (i32, i32) {
    %c0_i32 = arith.constant 0 : i32
    %c0_i32_0 = arith.constant 0 : i32
    return %arg0, %c0_i32 : i32, i32
  }
}

module attributes {stable_mosaic.version = 11 : i64} {
  func.func @_potential_kernel(%arg0: i32, %arg1: memref<1x8x3xf32, #tpu.memory_space<vmem>>, %arg2: memref<5x1x16xf32, #tpu.memory_space<vmem>>, %arg3: memref<1x16xf32, #tpu.memory_space<vmem>>, %arg4: memref<3x16x8xf32, #tpu.memory_space<vmem>>, %arg5: memref<1x8xf32, #tpu.memory_space<vmem>>, %arg6: memref<3x8x1xf32, #tpu.memory_space<vmem>>, %arg7: memref<1x1xf32, #tpu.memory_space<vmem>>, %arg8: memref<1x8x1xf32, #tpu.memory_space<vmem>>, %arg9: memref<1x8x1xf32, #tpu.memory_space<vmem>>, %arg10: memref<1x12x16xf32, #tpu.memory_space<vmem>>) attributes {dimension_semantics = [#tpu.dimension_semantics<parallel>], iteration_bounds = array<i64: 2>, scalar_prefetch = 0 : i64, scratch_operands = 1 : i64, tpu.core_type = #tpu.core_type<tc>, window_params = [{transform_indices = @transform_0, window_bounds = array<i64: 1, 8, 3>}, {pipeline_mode = #tpu.pipeline_mode<synchronous>, transform_indices = @transform_1, window_bounds = array<i64: 5, 1, 16>}, {pipeline_mode = #tpu.pipeline_mode<synchronous>, transform_indices = @transform_2, window_bounds = array<i64: 1, 16>}, {pipeline_mode = #tpu.pipeline_mode<synchronous>, transform_indices = @transform_3, window_bounds = array<i64: 3, 16, 8>}, {pipeline_mode = #tpu.pipeline_mode<synchronous>, transform_indices = @transform_4, window_bounds = array<i64: 1, 8>}, {pipeline_mode = #tpu.pipeline_mode<synchronous>, transform_indices = @transform_5, window_bounds = array<i64: 3, 8, 1>}, {pipeline_mode = #tpu.pipeline_mode<synchronous>, transform_indices = @transform_6, window_bounds = array<i64: 1, 1>}, {transform_indices = @transform_7, window_bounds = array<i64: 1, 8, 1>}, {transform_indices = @transform_8, window_bounds = array<i64: 1, 8, 1>}]} {
    %c0 = arith.constant 0 : index
    %c0_0 = arith.constant 0 : index
    %c0_1 = arith.constant 0 : index
    %0 = vector.load %arg1[%c0, %c0_0, %c0_1] : memref<1x8x3xf32, #tpu.memory_space<vmem>>, vector<1x8x3xf32>
    %1 = vector.extract_strided_slice %0 {offsets = [0, 0, 0], sizes = [1, 8, 1], strides = [1, 1, 1]} : vector<1x8x3xf32> to vector<1x8x1xf32>
    %2 = vector.extract_strided_slice %0 {offsets = [0, 0, 1], sizes = [1, 8, 1], strides = [1, 1, 1]} : vector<1x8x3xf32> to vector<1x8x1xf32>
    %3 = arith.subf %1, %2 : vector<1x8x1xf32>
    %c0_2 = arith.constant 0 : index
    %c0_3 = arith.constant 0 : index
    %c0_4 = arith.constant 0 : index
    %4 = vector.load %arg8[%c0_2, %c0_3, %c0_4] : memref<1x8x1xf32, #tpu.memory_space<vmem>>, vector<1x8x1xf32>
    tpu.vector_store %arg8[%c0_2, %c0_3, %c0_4], %3 {strides = array<i32>} : memref<1x8x1xf32, #tpu.memory_space<vmem>>, vector<1x8x1xf32>,
    %cst = arith.constant 0.000000e+00 : f32
    %5 = vector.broadcast %cst : f32 to vector<1x2x16xf32>
    %c0_5 = arith.constant 0 : index
    %c0_6 = arith.constant 0 : index
    %c0_7 = arith.constant 0 : index
    %6 = vector.load %arg10[%c0_5, %c0_6, %c0_7] : memref<1x12x16xf32, #tpu.memory_space<vmem>>, vector<1x2x16xf32>
    tpu.vector_store %arg10[%c0_5, %c0_6, %c0_7], %5 {strides = array<i32>} : memref<1x12x16xf32, #tpu.memory_space<vmem>>, vector<1x2x16xf32>,
    %c0_8 = arith.constant 0 : index
    %c10 = arith.constant 10 : index
    %c0_9 = arith.constant 0 : index
    %7 = vector.load %arg10[%c0_8, %c10, %c0_9] : memref<1x12x16xf32, #tpu.memory_space<vmem>>, vector<1x2x16xf32>
    tpu.vector_store %arg10[%c0_8, %c10, %c0_9], %5 {strides = array<i32>} : memref<1x12x16xf32, #tpu.memory_space<vmem>>, vector<1x2x16xf32>,
    %c0_10 = arith.constant 0 : index
    %c2 = arith.constant 2 : index
    %c0_11 = arith.constant 0 : index
    %8 = vector.load %arg10[%c0_10, %c2, %c0_11] : memref<1x12x16xf32, #tpu.memory_space<vmem>>, vector<1x8x1xf32>
    tpu.vector_store %arg10[%c0_10, %c2, %c0_11], %3 {strides = array<i32>} : memref<1x12x16xf32, #tpu.memory_space<vmem>>, vector<1x8x1xf32>,
    %c0_12 = arith.constant 0 : index
    %c0_13 = arith.constant 0 : index
    %9 = vector.load %arg3[%c0_12, %c0_13] : memref<1x16xf32, #tpu.memory_space<vmem>>, vector<1x16xf32>
    %10 = vector.shape_cast %9 : vector<1x16xf32> to vector<1x1x16xf32>
    %11 = vector.shape_cast %10 : vector<1x1x16xf32> to vector<1x1x16xf32>
    %12 = vector.broadcast %11 : vector<1x1x16xf32> to vector<1x8x16xf32>
    %c0_14 = arith.constant 0 : index
    %c0_15 = arith.constant 0 : index
    %c0_16 = arith.constant 0 : index
    %13 = vector.load %arg10[%c0_14, %c0_15, %c0_16] : memref<1x12x16xf32, #tpu.memory_space<vmem>>, vector<1x8x1xf32>
    %c0_17 = arith.constant 0 : index
    %c0_18 = arith.constant 0 : index
    %c0_19 = arith.constant 0 : index
    %14 = vector.load %arg2[%c0_17, %c0_18, %c0_19] : memref<5x1x16xf32, #tpu.memory_space<vmem>>, vector<1x1x16xf32>
    %15 = vector.shape_cast %14 : vector<1x1x16xf32> to vector<1x16xf32>
    %16 = vector.shape_cast %15 : vector<1x16xf32> to vector<1x1x16xf32>
    %17 = vector.broadcast %13 : vector<1x8x1xf32> to vector<1x8x16xf32>
    %18 = vector.broadcast %16 : vector<1x1x16xf32> to vector<1x8x16xf32>
    %19 = arith.mulf %17, %18 : vector<1x8x16xf32>
    %20 = arith.addf %12, %19 : vector<1x8x16xf32>
    %c0_20 = arith.constant 0 : index
    %c1 = arith.constant 1 : index
    %c0_21 = arith.constant 0 : index
    %21 = vector.load %arg10[%c0_20, %c1, %c0_21] : memref<1x12x16xf32, #tpu.memory_space<vmem>>, vector<1x8x1xf32>
    %c1_22 = arith.constant 1 : index
    %c0_23 = arith.constant 0 : index
    %c0_24 = arith.constant 0 : index
    %22 = vector.load %arg2[%c1_22, %c0_23, %c0_24] : memref<5x1x16xf32, #tpu.memory_space<vmem>>, vector<1x1x16xf32>
    %23 = vector.shape_cast %22 : vector<1x1x16xf32> to vector<1x16xf32>
    %24 = vector.shape_cast %23 : vector<1x16xf32> to vector<1x1x16xf32>
    %25 = vector.broadcast %21 : vector<1x8x1xf32> to vector<1x8x16xf32>
    %26 = vector.broadcast %24 : vector<1x1x16xf32> to vector<1x8x16xf32>
    %27 = arith.mulf %25, %26 : vector<1x8x16xf32>
    %28 = arith.addf %20, %27 : vector<1x8x16xf32>
    %c0_25 = arith.constant 0 : index
    %c2_26 = arith.constant 2 : index
    %c0_27 = arith.constant 0 : index
    %29 = vector.load %arg10[%c0_25, %c2_26, %c0_27] : memref<1x12x16xf32, #tpu.memory_space<vmem>>, vector<1x8x1xf32>
    %c2_28 = arith.constant 2 : index
    %c0_29 = arith.constant 0 : index
    %c0_30 = arith.constant 0 : index
    %30 = vector.load %arg2[%c2_28, %c0_29, %c0_30] : memref<5x1x16xf32, #tpu.memory_space<vmem>>, vector<1x1x16xf32>
    %31 = vector.shape_cast %30 : vector<1x1x16xf32> to vector<1x16xf32>
    %32 = vector.shape_cast %31 : vector<1x16xf32> to vector<1x1x16xf32>
    %33 = vector.broadcast %29 : vector<1x8x1xf32> to vector<1x8x16xf32>
    %34 = vector.broadcast %32 : vector<1x1x16xf32> to vector<1x8x16xf32>
    %35 = arith.mulf %33, %34 : vector<1x8x16xf32>
    %36 = arith.addf %28, %35 : vector<1x8x16xf32>
    %c0_31 = arith.constant 0 : index
    %c3 = arith.constant 3 : index
    %c0_32 = arith.constant 0 : index
    %37 = vector.load %arg10[%c0_31, %c3, %c0_32] : memref<1x12x16xf32, #tpu.memory_space<vmem>>, vector<1x8x1xf32>
    %c3_33 = arith.constant 3 : index
    %c0_34 = arith.constant 0 : index
    %c0_35 = arith.constant 0 : index
    %38 = vector.load %arg2[%c3_33, %c0_34, %c0_35] : memref<5x1x16xf32, #tpu.memory_space<vmem>>, vector<1x1x16xf32>
    %39 = vector.shape_cast %38 : vector<1x1x16xf32> to vector<1x16xf32>
    %40 = vector.shape_cast %39 : vector<1x16xf32> to vector<1x1x16xf32>
    %41 = vector.broadcast %37 : vector<1x8x1xf32> to vector<1x8x16xf32>
    %42 = vector.broadcast %40 : vector<1x1x16xf32> to vector<1x8x16xf32>
    %43 = arith.mulf %41, %42 : vector<1x8x16xf32>
    %44 = arith.addf %36, %43 : vector<1x8x16xf32>
    %c0_36 = arith.constant 0 : index
    %c4 = arith.constant 4 : index
    %c0_37 = arith.constant 0 : index
    %45 = vector.load %arg10[%c0_36, %c4, %c0_37] : memref<1x12x16xf32, #tpu.memory_space<vmem>>, vector<1x8x1xf32>
    %c4_38 = arith.constant 4 : index
    %c0_39 = arith.constant 0 : index
    %c0_40 = arith.constant 0 : index
    %46 = vector.load %arg2[%c4_38, %c0_39, %c0_40] : memref<5x1x16xf32, #tpu.memory_space<vmem>>, vector<1x1x16xf32>
    %47 = vector.shape_cast %46 : vector<1x1x16xf32> to vector<1x16xf32>
    %48 = vector.shape_cast %47 : vector<1x16xf32> to vector<1x1x16xf32>
    %49 = vector.broadcast %45 : vector<1x8x1xf32> to vector<1x8x16xf32>
    %50 = vector.broadcast %48 : vector<1x1x16xf32> to vector<1x8x16xf32>
    %51 = arith.mulf %49, %50 : vector<1x8x16xf32>
    %52 = arith.addf %44, %51 : vector<1x8x16xf32>
    %cst_41 = arith.constant 0.000000e+00 : f32
    %53 = vector.broadcast %cst_41 : f32 to vector<1x8x16xf32>
    %54 = arith.maximumf %52, %53 : vector<1x8x16xf32>
    %c0_42 = arith.constant 0 : index
    %c2_43 = arith.constant 2 : index
    %c0_44 = arith.constant 0 : index
    %55 = vector.load %arg10[%c0_42, %c2_43, %c0_44] : memref<1x12x16xf32, #tpu.memory_space<vmem>>, vector<1x8x16xf32>
    tpu.vector_store %arg10[%c0_42, %c2_43, %c0_44], %54 {strides = array<i32>} : memref<1x12x16xf32, #tpu.memory_space<vmem>>, vector<1x8x16xf32>,
    %c0_45 = arith.constant 0 : index
    %c0_46 = arith.constant 0 : index
    %56 = vector.load %arg5[%c0_45, %c0_46] : memref<1x8xf32, #tpu.memory_space<vmem>>, vector<1x8xf32>
    %57 = vector.shape_cast %56 : vector<1x8xf32> to vector<1x1x8xf32>
    %58 = vector.shape_cast %57 : vector<1x1x8xf32> to vector<1x1x8xf32>
    %59 = vector.broadcast %58 : vector<1x1x8xf32> to vector<1x8x8xf32>
    %c0_47 = arith.constant 0 : index
    %c1_48 = arith.constant 1 : index
    %c0_49 = arith.constant 0 : index
    %60 = vector.load %arg10[%c0_47, %c1_48, %c0_49] : memref<1x12x16xf32, #tpu.memory_space<vmem>>, vector<1x8x16xf32>
    %c0_50 = arith.constant 0 : index
    %c0_51 = arith.constant 0 : index
    %c0_52 = arith.constant 0 : index
    %61 = vector.load %arg4[%c0_50, %c0_51, %c0_52] : memref<3x16x8xf32, #tpu.memory_space<vmem>>, vector<1x16x8xf32>
    %62 = vector.shape_cast %61 : vector<1x16x8xf32> to vector<16x8xf32>
    %63 = vector.shape_cast %60 : vector<1x8x16xf32> to vector<8x16xf32>
    %cst_53 = arith.constant dense<0.000000e+00> : vector<8x8xf32>
    %64 = tpu.matmul %63, %62, %cst_53 {dimension_numbers = #tpu.dot_dimension_numbers<[1], [0], [0], [1], [0, 0, 1, 1], [], []>} : vector<8x16xf32>, vector<16x8xf32>, vector<8x8xf32> -> vector<8x8xf32>
    %65 = vector.shape_cast %64 : vector<8x8xf32> to vector<1x8x8xf32>
    %66 = arith.addf %59, %65 : vector<1x8x8xf32>
    %c0_54 = arith.constant 0 : index
    %c2_55 = arith.constant 2 : index
    %c0_56 = arith.constant 0 : index
    %67 = vector.load %arg10[%c0_54, %c2_55, %c0_56] : memref<1x12x16xf32, #tpu.memory_space<vmem>>, vector<1x8x16xf32>
    %c1_57 = arith.constant 1 : index
    %c0_58 = arith.constant 0 : index
    %c0_59 = arith.constant 0 : index
    %68 = vector.load %arg4[%c1_57, %c0_58, %c0_59] : memref<3x16x8xf32, #tpu.memory_space<vmem>>, vector<1x16x8xf32>
    %69 = vector.shape_cast %68 : vector<1x16x8xf32> to vector<16x8xf32>
    %70 = vector.shape_cast %67 : vector<1x8x16xf32> to vector<8x16xf32>
    %cst_60 = arith.constant dense<0.000000e+00> : vector<8x8xf32>
    %71 = tpu.matmul %70, %69, %cst_60 {dimension_numbers = #tpu.dot_dimension_numbers<[1], [0], [0], [1], [0, 0, 1, 1], [], []>} : vector<8x16xf32>, vector<16x8xf32>, vector<8x8xf32> -> vector<8x8xf32>
    %72 = vector.shape_cast %71 : vector<8x8xf32> to vector<1x8x8xf32>
    %73 = arith.addf %66, %72 : vector<1x8x8xf32>
    %c0_61 = arith.constant 0 : index
    %c3_62 = arith.constant 3 : index
    %c0_63 = arith.constant 0 : index
    %74 = vector.load %arg10[%c0_61, %c3_62, %c0_63] : memref<1x12x16xf32, #tpu.memory_space<vmem>>, vector<1x8x16xf32>
    %c2_64 = arith.constant 2 : index
    %c0_65 = arith.constant 0 : index
    %c0_66 = arith.constant 0 : index
    %75 = vector.load %arg4[%c2_64, %c0_65, %c0_66] : memref<3x16x8xf32, #tpu.memory_space<vmem>>, vector<1x16x8xf32>
    %76 = vector.shape_cast %75 : vector<1x16x8xf32> to vector<16x8xf32>
    %77 = vector.shape_cast %74 : vector<1x8x16xf32> to vector<8x16xf32>
    %cst_67 = arith.constant dense<0.000000e+00> : vector<8x8xf32>
    %78 = tpu.matmul %77, %76, %cst_67 {dimension_numbers = #tpu.dot_dimension_numbers<[1], [0], [0], [1], [0, 0, 1, 1], [], []>} : vector<8x16xf32>, vector<16x8xf32>, vector<8x8xf32> -> vector<8x8xf32>
    %79 = vector.shape_cast %78 : vector<8x8xf32> to vector<1x8x8xf32>
    %80 = arith.addf %73, %79 : vector<1x8x8xf32>
    %cst_68 = arith.constant 0.000000e+00 : f32
    %81 = vector.broadcast %cst_68 : f32 to vector<1x8x8xf32>
    %82 = arith.maximumf %80, %81 : vector<1x8x8xf32>
    %c0_69 = arith.constant 0 : index
    %c2_70 = arith.constant 2 : index
    %c0_71 = arith.constant 0 : index
    %83 = vector.load %arg10[%c0_69, %c2_70, %c0_71] : memref<1x12x16xf32, #tpu.memory_space<vmem>>, vector<1x8x8xf32>
    tpu.vector_store %arg10[%c0_69, %c2_70, %c0_71], %82 {strides = array<i32>} : memref<1x12x16xf32, #tpu.memory_space<vmem>>, vector<1x8x8xf32>,
    %c0_72 = arith.constant 0 : index
    %c0_73 = arith.constant 0 : index
    %84 = vector.load %arg7[%c0_72, %c0_73] : memref<1x1xf32, #tpu.memory_space<vmem>>, vector<1x1xf32>
    %85 = vector.shape_cast %84 : vector<1x1xf32> to vector<1x1x1xf32>
    %86 = vector.shape_cast %85 : vector<1x1x1xf32> to vector<1x1x1xf32>
    %87 = vector.broadcast %86 : vector<1x1x1xf32> to vector<1x8x1xf32>
    %c0_74 = arith.constant 0 : index
    %c1_75 = arith.constant 1 : index
    %c0_76 = arith.constant 0 : index
    %88 = vector.load %arg10[%c0_74, %c1_75, %c0_76] : memref<1x12x16xf32, #tpu.memory_space<vmem>>, vector<1x8x8xf32>
    %c0_77 = arith.constant 0 : index
    %c0_78 = arith.constant 0 : index
    %c0_79 = arith.constant 0 : index
    %89 = vector.load %arg6[%c0_77, %c0_78, %c0_79] : memref<3x8x1xf32, #tpu.memory_space<vmem>>, vector<1x8x1xf32>
    %90 = vector.shape_cast %89 : vector<1x8x1xf32> to vector<8x1xf32>
    %91 = vector.shape_cast %88 : vector<1x8x8xf32> to vector<8x8xf32>
    %cst_80 = arith.constant dense<0.000000e+00> : vector<8x1xf32>
    %92 = tpu.matmul %91, %90, %cst_80 {dimension_numbers = #tpu.dot_dimension_numbers<[1], [0], [0], [1], [0, 0, 1, 1], [], []>} : vector<8x8xf32>, vector<8x1xf32>, vector<8x1xf32> -> vector<8x1xf32>
    %93 = vector.shape_cast %92 : vector<8x1xf32> to vector<1x8x1xf32>
    %94 = arith.addf %87, %93 : vector<1x8x1xf32>
    %c0_81 = arith.constant 0 : index
    %c2_82 = arith.constant 2 : index
    %c0_83 = arith.constant 0 : index
    %95 = vector.load %arg10[%c0_81, %c2_82, %c0_83] : memref<1x12x16xf32, #tpu.memory_space<vmem>>, vector<1x8x8xf32>
    %c1_84 = arith.constant 1 : index
    %c0_85 = arith.constant 0 : index
    %c0_86 = arith.constant 0 : index
    %96 = vector.load %arg6[%c1_84, %c0_85, %c0_86] : memref<3x8x1xf32, #tpu.memory_space<vmem>>, vector<1x8x1xf32>
    %97 = vector.shape_cast %96 : vector<1x8x1xf32> to vector<8x1xf32>
    %98 = vector.shape_cast %95 : vector<1x8x8xf32> to vector<8x8xf32>
    %cst_87 = arith.constant dense<0.000000e+00> : vector<8x1xf32>
    %99 = tpu.matmul %98, %97, %cst_87 {dimension_numbers = #tpu.dot_dimension_numbers<[1], [0], [0], [1], [0, 0, 1, 1], [], []>} : vector<8x8xf32>, vector<8x1xf32>, vector<8x1xf32> -> vector<8x1xf32>
    %100 = vector.shape_cast %99 : vector<8x1xf32> to vector<1x8x1xf32>
    %101 = arith.addf %94, %100 : vector<1x8x1xf32>
    %c0_88 = arith.constant 0 : index
    %c3_89 = arith.constant 3 : index
    %c0_90 = arith.constant 0 : index
    %102 = vector.load %arg10[%c0_88, %c3_89, %c0_90] : memref<1x12x16xf32, #tpu.memory_space<vmem>>, vector<1x8x8xf32>
    %c2_91 = arith.constant 2 : index
    %c0_92 = arith.constant 0 : index
    %c0_93 = arith.constant 0 : index
    %103 = vector.load %arg6[%c2_91, %c0_92, %c0_93] : memref<3x8x1xf32, #tpu.memory_space<vmem>>, vector<1x8x1xf32>
    %104 = vector.shape_cast %103 : vector<1x8x1xf32> to vector<8x1xf32>
    %105 = vector.shape_cast %102 : vector<1x8x8xf32> to vector<8x8xf32>
    %cst_94 = arith.constant dense<0.000000e+00> : vector<8x1xf32>
    %106 = tpu.matmul %105, %104, %cst_94 {dimension_numbers = #tpu.dot_dimension_numbers<[1], [0], [0], [1], [0, 0, 1, 1], [], []>} : vector<8x8xf32>, vector<8x1xf32>, vector<8x1xf32> -> vector<8x1xf32>
    %107 = vector.shape_cast %106 : vector<8x1xf32> to vector<1x8x1xf32>
    %108 = arith.addf %101, %107 : vector<1x8x1xf32>
    %c0_95 = arith.constant 0 : index
    %c0_96 = arith.constant 0 : index
    %c0_97 = arith.constant 0 : index
    %109 = vector.load %arg9[%c0_95, %c0_96, %c0_97] : memref<1x8x1xf32, #tpu.memory_space<vmem>>, vector<1x8x1xf32>
    tpu.vector_store %arg9[%c0_95, %c0_96, %c0_97], %108 {strides = array<i32>} : memref<1x8x1xf32, #tpu.memory_space<vmem>>, vector<1x8x1xf32>,
    return
  }
  func.func @transform_0(%arg0: i32) -> (i32, i32, i32) {
    %c0_i32 = arith.constant 0 : i32
    %c0_i32_0 = arith.constant 0 : i32
    %c0_i32_1 = arith.constant 0 : i32
    return %arg0, %c0_i32, %c0_i32_0 : i32, i32, i32
  }
  func.func @transform_1(%arg0: i32) -> (i32, i32, i32) {
    %c0_i32 = arith.constant 0 : i32
    %c0_i32_0 = arith.constant 0 : i32
    %c0_i32_1 = arith.constant 0 : i32
    %c0_i32_2 = arith.constant 0 : i32
    return %c0_i32, %c0_i32_0, %c0_i32_1 : i32, i32, i32
  }
  func.func @transform_2(%arg0: i32) -> (i32, i32) {
    %c0_i32 = arith.constant 0 : i32
    %c0_i32_0 = arith.constant 0 : i32
    %c0_i32_1 = arith.constant 0 : i32
    return %c0_i32, %c0_i32_0 : i32, i32
  }
  func.func @transform_3(%arg0: i32) -> (i32, i32, i32) {
    %c0_i32 = arith.constant 0 : i32
    %c0_i32_0 = arith.constant 0 : i32
    %c0_i32_1 = arith.constant 0 : i32
    %c0_i32_2 = arith.constant 0 : i32
    return %c0_i32, %c0_i32_0, %c0_i32_1 : i32, i32, i32
  }
  func.func @transform_4(%arg0: i32) -> (i32, i32) {
    %c0_i32 = arith.constant 0 : i32
    %c0_i32_0 = arith.constant 0 : i32
    %c0_i32_1 = arith.constant 0 : i32
    return %c0_i32, %c0_i32_0 : i32, i32
  }
  func.func @transform_5(%arg0: i32) -> (i32, i32, i32) {
    %c0_i32 = arith.constant 0 : i32
    %c0_i32_0 = arith.constant 0 : i32
    %c0_i32_1 = arith.constant 0 : i32
    %c0_i32_2 = arith.constant 0 : i32
    return %c0_i32, %c0_i32_0, %c0_i32_1 : i32, i32, i32
  }
  func.func @transform_6(%arg0: i32) -> (i32, i32) {
    %c0_i32 = arith.constant 0 : i32
    %c0_i32_0 = arith.constant 0 : i32
    %c0_i32_1 = arith.constant 0 : i32
    return %c0_i32, %c0_i32_0 : i32, i32
  }
  func.func @transform_7(%arg0: i32) -> (i32, i32, i32) {
    %c0_i32 = arith.constant 0 : i32
    %c0_i32_0 = arith.constant 0 : i32
    %c0_i32_1 = arith.constant 0 : i32
    return %arg0, %c0_i32, %c0_i32_0 : i32, i32, i32
  }
  func.func @transform_8(%arg0: i32) -> (i32, i32, i32) {
    %c0_i32 = arith.constant 0 : i32
    %c0_i32_0 = arith.constant 0 : i32
    %c0_i32_1 = arith.constant 0 : i32
    return %arg0, %c0_i32, %c0_i32_0 : i32, i32, i32
  }
}

</mosaic_0001>

<bundles_post_ra>
// kernel: _forward_arrays.4
= control target key start
LH: loop header
LB: loop body
LE: loop exit
PB: predicated region body
PF: predicated region fallthrough
CT: control target
= control target key end

     0   :  { %v338_v0 = vmov 0.0   ;;  %vm339_vm0 = vmmov 0   ;;  %vm183_vm1 = vcmask 523264   ;;  %vm246_vm2 = vcmask 64512   ;;  %s421_s1 = inlined_call_operand.vmem [shape: bf16[128,64], index: 1, kind: input, shape index: {}]   ;;  %s422_s3 = inlined_call_operand.vmem [shape: bf16[64,128], index: 3, kind: input, shape index: {}]   ;;  %s423_s0 = inlined_call_operand.vmem [shape: bf16[16,128], index: 0, kind: input, shape index: {}]   ;;  %s424_s2 = inlined_call_operand.vmem [shape: f32[1,64], index: 2, kind: input, shape index: {}]   ;;  %s425_s4 = inlined_call_operand.vmem [shape: f32[1,128], index: 4, kind: input, shape index: {}]   ;;  %s426_s5 = inlined_call_operand.vmem [shape: f32[16,8], index: 5, kind: output, shape index: {}]  }
   0x1   :  { %283 = vmatprep.subr.bf16.mxu0 %v338_v0  ;;  %v317_v1 = vld [vmem:[%s421_s1] sm:$0xff]   ;;  %299 = vmatprep.mubr.msk.bf16.mxu0 %vm339_vm0, %v338_v0  ;;  %v318_v2 = vld [vmem:[%s421_s1 + $0x8] sm:$0xff]   ;;  %v319_v3 = vld [vmem:[%s421_s1 + $0x10] sm:$0xff]  }
   0x2   :  { %303 = vmatprep.subr.bf16.mxu1 %v338_v0  ;;  %311 = vmatprep.mubr.msk.bf16.mxu1 %vm339_vm0, %v338_v0  ;;  %v326_v4 = vld [vmem:[%s422_s3] sm:$0xff]   ;;  %v320_v5 = vld [vmem:[%s421_s1 + $0x18] sm:$0xff]   ;;  %v327_v6 = vld [vmem:[%s422_s3 + $0x8] sm:$0xff]  }
   0x3   :  { %284 = vmatpush3.bf16.msra.mxu0 %v317_v1  ;;  %304 = vmatpush3.bf16.msra.mxu1 %v326_v4  ;;  %v321_v7 = vld [vmem:[%s421_s1 + $0x20] sm:$0xff]   ;;  %v322_v8 = vld [vmem:[%s421_s1 + $0x28] sm:$0xff]   ;;  %v323_v9 = vld [vmem:[%s421_s1 + $0x30] sm:$0xff]  }
   0x4   :  { %285 = vmatprep.subr.bf16.mxu0 %v338_v0  ;;  %305 = vmatprep.subr.bf16.mxu1 %v338_v0  ;;  %v324_v10 = vld [vmem:[%s421_s1 + $0x38] sm:$0xff]   ;;  %v325_v11 = vld [vmem:[%s423_s0] sm:$0xff]   ;;  %v328_v12 = vld [vmem:[%s422_s3 + $0x10] sm:$0xff]  }
   0x5   :  { %v329_v13 = vld [vmem:[%s422_s3 + $0x18] sm:$0xff]   ;;  %v253_v14 = vld [vmem:[%s424_s2] ss:$0 sm:$0xff] }
   0x6   :  { %v263_v24 = vld [vmem:[%s425_s4] ss:$0 sm:$0xff] }
   0x7   :  { %286 = vmatpush3.bf16.msra.mxu0 %v318_v2  ;;  %306 = vmatpush3.bf16.msra.mxu1 %v327_v6 }
   0x8   :  { %287 = vmatprep.subr.bf16.mxu0 %v338_v0  ;;  %307 = vmatprep.subr.bf16.mxu1 %v338_v0 }
   0xb   :  { %288 = vmatpush3.bf16.msra.mxu0 %v319_v3  ;;  %308 = vmatpush3.bf16.msra.mxu1 %v328_v12 }
   0xc   :  { %289 = vmatprep.subr.bf16.mxu0 %v338_v0  ;;  %309 = vmatprep.subr.bf16.mxu1 %v338_v0 }
   0xf   :  { %290 = vmatpush3.bf16.msra.mxu0 %v320_v5  ;;  %310 = vmatpush3.bf16.msra.mxu1 %v329_v13 }
  0x10   :  { %291 = vmatprep.subr.bf16.mxu0 %v338_v0 }
  0x13   :  { %292 = vmatpush3.bf16.msra.mxu0 %v321_v7 }
  0x14   :  { %293 = vmatprep.subr.bf16.mxu0 %v338_v0 }
  0x17   :  { %294 = vmatpush3.bf16.msra.mxu0 %v322_v8 }
  0x18   :  { %295 = vmatprep.subr.bf16.mxu0 %v338_v0 }
  0x1b   :  { %296 = vmatpush3.bf16.msra.mxu0 %v323_v9 }
  0x1c   :  { %297 = vmatprep.subr.bf16.mxu0 %v338_v0 }
  0x1f   :  { %298 = vmatpush3.bf16.msra.mxu0 %v324_v10 }
  0x22   :  { %300 = vmatmul.mubr.bf16.vlgmr.msra.gmra.mrb[0].mxu0 %v325_v11 }
  0xf5   :  { %v134_v15 = vpop.f32.mrb[0].mxu0 }
  0xf6   :  { %v135_v16 = vadd.f32 %v253_v14, %v134_v15  ;;  %v301_v17 = vpop.f32.mrb[1].mxu0 }
  0xf7   :  { %v137_v18 = vpop.f32.mrb[2].mxu0 }
  0xf8   :  { %v138_v19 = vadd.f32 %v253_v14, %v137_v18  ;;  %v302_v20 = vpop.f32.mrb[3].mxu0  ;;  %v141_v21 = vmax.f32 %v135_v16, 0.0 }
  0xfa   :  { %v142_v22 = vmax.f32 %v138_v19, 0.0 }
  0xfc   :  { %v143_v23 = vpack.c.bf16 %v142_v22, %v141_v21 }
  0xfe   :  { %312 = vmatmul.mubr.msk.bf16.vlgmr.msra.gmra.mrb[0].mxu1 %vm183_vm1, %v143_v23 }
 0x1d1   :  { %v221_v25 = vpop.f32.mrb[0].mxu1 }
 0x1d2   :  { %v222_v26 = vadd.f32 %v263_v24, %v221_v25  ;;  %v313_v27 = vpop.f32.mrb[1].mxu1 }
 0x1d3   :  { %v224_v28 = vpop.f32.mrb[2].mxu1 }
 0x1d4   :  { %228 = vmax.xlane.f32.xlu0 %v222_v26  ;;  %v314_v29 = vpop.f32.mrb[3].mxu1  ;;  %v225_v30 = vadd.f32 %v263_v24, %v224_v28 }
 0x1d8   :  { %230 = vmax.xlane.f32.xlu0 %v225_v30 }
 0x261   :  { %v229_v31 = vpop.xlane.xlu0 %228 }
 0x262   :  { %v232_v32 = vsub.f32 %v222_v26, %v229_v31 }
 0x264   :  { %v234_v33 = vmul.f32 1.442695, %v232_v32 }
 0x265   :  { %v231_v34 = vpop.xlane.xlu0 %230 }
 0x266   :  { %330 = vpow2.f32 %v234_v33  ;;  %v233_v35 = vsub.f32 %v225_v30, %v231_v34 }
 0x268   :  { %v236_v36 = vmul.f32 1.442695, %v233_v35 }
 0x26a   :  { %332 = vpow2.f32 %v236_v36 }
 0x270   :  { %v331_v37 = vpop.eup %330 }
 0x271   :  { %238 = vadd.xlane.f32.xlu1 %v331_v37 }
 0x274   :  { %v333_v38 = vpop.eup %332 }
 0x275   :  { %240 = vadd.xlane.f32.xlu1 %v333_v38 }
 0x2fe   :  { %v239_v39 = vpop.xlane.xlu1 %238 }
 0x2ff   :  { %334 = vrcp.f32 %v239_v39 }
 0x302   :  { %v241_v40 = vpop.xlane.xlu1 %240 }
 0x303   :  { %336 = vrcp.f32 %v241_v40 }
 0x309   :  { %v335_v41 = vpop.eup %334 }
 0x30a   :  { %v244_v42 = vmul.f32 %v335_v41, %v331_v37 }
 0x30c   :  { %247 = vst.msk [vmem:[%s426_s5] sm:$0xff] %vm246_vm2, %v244_v42 }
 0x30d   :  { %v337_v43 = vpop.eup %336 }
 0x30e   :  { %v245_v44 = vmul.f32 %v337_v43, %v333_v38 }
 0x310   :  { %248 = vst.msk [vmem:[%s426_s5 + $0x8] sm:$0xff] %vm246_vm2, %v245_v44 }

// kernel: _forward_arrays.3
= control target key start
LH: loop header
LB: loop body
LE: loop exit
PB: predicated region body
PF: predicated region fallthrough
CT: control target
= control target key end

     0   :  { %v155_v0 = vmov 0.0   ;;  %vm156_vm0 = vmmov 0   ;;  %vm43_vm1 = vcmask 261120   ;;  %vm116_vm2 = vcmask 1040384   ;;  %s203_s1 = inlined_call_operand.vmem [shape: bf16[32,128], index: 1, kind: input, shape index: {}]   ;;  %s204_s0 = inlined_call_operand.vmem [shape: f32[16,32], index: 0, kind: input, shape index: {}]   ;;  %s205_s2 = inlined_call_operand.vmem [shape: f32[1,128], index: 2, kind: input, shape index: {}]   ;;  %s206_s3 = inlined_call_operand.vmem [shape: bf16[16,128], index: 3, kind: output, shape index: {0}]   ;;  %s207_s4 = inlined_call_operand.vmem [shape: f32[1,2,128], index: 4, kind: output, shape index: {1}]  }
   0x1   :  { %143 = vmatprep.subr.bf16.mxu0 %v155_v0  ;;  %v153_v1 = vld [vmem:[%s203_s1] sm:$0xff]   ;;  %147 = vmatprep.mubr.msk.bf16.mxu0 %vm156_vm0, %v155_v0  ;;  %v154_v2 = vld [vmem:[%s203_s1 + $0x8] sm:$0xff]  }
   0x2   :  { %144 = vmatpush3.bf16.msra.mxu0 %v153_v1  ;;  %v17_v3 = vld [vmem:[%s204_s0] sm:$0xff]  ;;  %v18_v4 = vld [vmem:[%s204_s0 + $0x8] sm:$0xff] }
   0x3   :  { %145 = vmatprep.subr.bf16.mxu0 %v155_v0  ;;  %v19_v5 = vpack.c.bf16 %v18_v4, %v17_v3  ;;  %v127_v6 = vld [vmem:[%s205_s2] ss:$0 sm:$0xff] }
   0x6   :  { %146 = vmatpush3.bf16.msra.mxu0 %v154_v2 }
   0x9   :  { %148 = vmatmul.mubr.msk.bf16.vlgmr.msra.gmra.mrb[0].mxu0 %vm43_vm1, %v19_v5 }
  0xdc   :  { %v81_v7 = vpop.f32.mrb[0].mxu0 }
  0xdd   :  { %v82_v8 = vadd.f32 %v127_v6, %v81_v7  ;;  %v149_v9 = vpop.f32.mrb[1].mxu0 }
  0xde   :  { %v84_v10 = vpop.f32.mrb[2].mxu0 }
  0xdf   :  { %v88_v11 = vmax.f32 %v82_v8, 0.0  ;;  %v85_v12 = vadd.f32 %v127_v6, %v84_v10  ;;  %v150_v13 = vpop.f32.mrb[3].mxu0 }
  0xe1   :  { %v89_v14 = vmax.f32 %v85_v12, 0.0  ;;  %v107_v15 = vmul.f32 %v88_v11, %v88_v11 }
  0xe3   :  { %v138_v16 = vpack.c.bf16 %v89_v14, %v88_v11  ;;  %v100_v17 = vadd.f32 %v89_v14, %v88_v11  ;;  %v108_v18 = vmul.f32 %v89_v14, %v89_v14 }
  0xe5   :  { %139 = vst [vmem:[%s206_s3] sm:$0xff] %v138_v16   ;;  %v101_v19 = vrot.slane %v100_v17, 4  ;;  %v109_v20 = vadd.f32 %v108_v18, %v107_v15 }
  0xe7   :  { %v102_v21 = vadd.f32 %v101_v19, %v100_v17  ;;  %v110_v22 = vrot.slane %v109_v20, 4 }
  0xe9   :  { %v103_v23 = vrot.slane %v102_v21, 2  ;;  %v111_v24 = vadd.f32 %v110_v22, %v109_v20 }
  0xeb   :  { %v104_v25 = vadd.f32 %v103_v23, %v102_v21  ;;  %v112_v26 = vrot.slane %v111_v24, 2 }
  0xed   :  { %v105_v27 = vrot.slane %v104_v25, 1  ;;  %v113_v28 = vadd.f32 %v112_v26, %v111_v24 }
  0xef   :  { %v114_v29 = vrot.slane %v113_v28, 1  ;;  %v106_v30 = vadd.f32 %v105_v27, %v104_v25 }
  0xf1   :  { %v115_v31 = vadd.f32 %v114_v29, %v113_v28 }
  0xf3   :  { %v117_v32 = vsel %vm116_vm2, %v106_v30, %v115_v31 }
  0xf4   :  { %118 = vst [vmem:[%s207_s4] sm:$0x3] %v117_v32 }

// kernel: _forward_arrays.5
= control target key start
LH: loop header
LB: loop body
LE: loop exit
PB: predicated region body
PF: predicated region fallthrough
CT: control target
= control target key end

     0   :  { %s1160_s29 = smov 0   ;;  %s1257_s0 = inlined_call_operand.vmem [shape: f32[2,8,3], index: 0, kind: input, shape index: {}]   ;;  %s1258_s1 = inlined_call_operand.vmem [shape: f32[5,1,16], index: 1, kind: input, shape index: {}]   ;;  %s1259_s2 = inlined_call_operand.vmem [shape: f32[1,16], index: 2, kind: input, shape index: {}]   ;;  %s1260_s3 = inlined_call_operand.vmem [shape: f32[3,16,8], index: 3, kind: input, shape index: {}]   ;;  %s1261_s4 = inlined_call_operand.vmem [shape: f32[1,8], index: 4, kind: input, shape index: {}]   ;;  %s1262_s5 = inlined_call_operand.vmem [shape: f32[3,8,1], index: 5, kind: input, shape index: {}]   ;;  %s1263_s6 = inlined_call_operand.<no memory space> [shape: f32[1,1], index: 6, kind: input, shape index: {}]   ;;  %s1264_s7 = inlined_call_operand.vmem [shape: f32[2,8,1], index: 7, kind: output, shape index: {0}]   ;;  %s1265_s8 = inlined_call_operand.vmem [shape: f32[2,8,1], index: 8, kind: output, shape index: {1}]  }
   0x1   :  { %v14_v0 = vstv %s1263_s6 }
   0x2   :  { %15 = vst [vmem:[#allocation3] sm:$0x1] %v14_v0 }
   0x3 LB: > { %s980_s30 = sadd.s32 4294967295, %s1105_s29   ;;  %p984_p0 = scmp.ge.s32.totalorder %s1105_s29, 1  ;;  %s1105_s29 = sphi %s1160_s29, %s21_s29  }
   0x4   : > { %p266_p1 = scmp.lt.s32.totalorder %s1105_s29, 3 }
   0x6   : > { %p267_p2 = pnand %p984_p0, %p266_p1 }
   0x7   : > { %p302_p3 = scmp.lt.s32.totalorder (!%p267_p2), %s980_s30, 1  ;;  %vm322_vm0 = vcmask (!%p267_p2), 123904   ;;  %v1107_v1 = vmov (!%p267_p2), 0   ;;  %v1108_v2 = vmov (!%p267_p2), 0.0   ;;  %s1109_s12 = smov (!%p267_p2), 127   ;;  %vm320_vm1 = vcmask (!%p267_p2), 7168  }
   0x8   : > { %270 = sbr.rel (%p267_p2) target bundleno = 767 (0x2ff), region = 48  ;;  %1098 = vset.pattern.permute.xlu1 (!%p267_p2), %v1107_v1  ;;  %1097 = vset.pattern.permute.xlu0 (!%p267_p2), %v1107_v1  ;;  %323 = vst.msk [vmem:[#allocation2] sm:$0x3] (!%p267_p2), %vm322_vm0, %v1108_v2  ;;  %324 = vst.msk [vmem:[#allocation2 + $0xa] sm:$0x3] (!%p267_p2), %vm322_vm0, %v1108_v2  ;;  %v423_v11 = vld [vmem:[%s1260_s3] sm:$0xff] (!%p267_p2) }
   0x9   : > { %1050 = vmatprep.subr.mxu1 (!%p267_p2), %v1108_v2  ;;  %v424_v12 = vld [vmem:[%s1260_s3 + $0x8] sm:$0xff] (!%p267_p2)  ;;  %v1110_v13 = vmov (!%p267_p2), 0.0|0.0   ;;  %vm1111_vm2 = vmmov (!%p267_p2), 0   ;;  %v989_v15 = vld [vmem:[%s1258_s1] ss:$0 sm:$0xff] (!%p267_p2)  ;;  %vm413_vm3 = vcmask (!%p267_p2), 130048  }
   0xa   : > { %1065 = vmatprep.subr.bf16.mxu0 (!%p267_p2), %v1110_v13  ;;  %v1066_v14 = vpack.c.bf16 (!%p267_p2), %v424_v12, %v423_v11  ;;  %1033 = vmatprep.mubr.msk.f32.mxu0 (!%p267_p2), %vm1111_vm2, %v1108_v2  ;;  %v991_v16 = vld [vmem:[%s1258_s1 + $0x1] ss:$0 sm:$0xff] (!%p267_p2)  ;;  %v988_v18 = vld [vmem:[%s1259_s2] ss:$0 sm:$0xff] (!%p267_p2)  ;;  %v993_v21 = vld [vmem:[%s1258_s1 + $0x2] ss:$0 sm:$0xff] (!%p267_p2) }
   0xb   : > { %1052 = vmatprep.mubr.msk.f32.mxu1 (!%p267_p2), %vm1111_vm2, %v1108_v2  ;;  %v995_v27 = vld [vmem:[%s1258_s1 + $0x3] ss:$0 sm:$0xff] (!%p267_p2)  ;;  %v997_v28 = vld [vmem:[%s1258_s1 + $0x4] ss:$0 sm:$0xff] (!%p267_p2)  ;;  %v1000_v37 = vld [vmem:[%s1260_s3 + $0x10] sm:$0xff] (!%p267_p2)  ;;  %vm656_vm4 = vcmask (!%p267_p2), 64512  }
   0xc   : > { %1067 = vmatpush3.bf16.msra.mxu0 (!%p267_p2), %v1066_v14  ;;  %v1001_v38 = vld [vmem:[%s1260_s3 + $0x18] sm:$0xff] (!%p267_p2)  ;;  %v1003_v41 = vld [vmem:[%s1260_s3 + $0x20] sm:$0xff] (!%p267_p2)  ;;  %v1004_v42 = vld [vmem:[%s1260_s3 + $0x28] sm:$0xff] (!%p267_p2) }
   0xd   : > { %1068 = vmatprep.subr.bf16.mxu0 (!%p267_p2), %v1110_v13  ;;  %v1069_v39 = vpack.c.bf16 (!%p267_p2), %v1001_v38, %v1000_v37  ;;  %v1072_v43 = vpack.c.bf16 (!%p267_p2), %v1004_v42, %v1003_v41  ;;  %v666_v46 = vld [vmem:[%s1262_s5] sm:$0xff] (!%p267_p2)  ;;  %v1008_v52 = vld [vmem:[%s1262_s5 + $0x8] sm:$0xff] (!%p267_p2)  ;;  %v1010_v54 = vld [vmem:[%s1262_s5 + $0x10] sm:$0xff] (!%p267_p2) }
   0xe   : > { %1051 = vmatpush3.msra.mxu1 (!%p267_p2), %v666_v46  ;;  %v998_v47 = vld [vmem:[%s1261_s4] ss:$0 sm:$0xff] (!%p267_p2)  ;;  %v1006_v57 = vld [vmem:[#allocation3] ss:$0 sm:$0xff] (!%p267_p2) }
   0xf   : > { %s1267_s30 = smov (!%p302_p3, %s980_s30), 1  ;;  %1055 = vmatprep.subr.mxu1 %v1108_v2 }
  0x10   : > { %s1171_s6 = sshll.u32 %s1267_s30, 3 }
  0x11   : > { %s305_s11 = scalar_lea.vmem %s1257_s0, %s1171_s6  ;;  %s309_s15 = scalar_lea.vmem %s1264_s7, %s1171_s6 }
  0x12   : > { %v314_v3 = vld [vmem:[%s305_s11] sm:$0xff]  ;;  %s313_s30 = scalar_lea.vmem %s1265_s8, %s1171_s6 }
  0x13   : > { %316 = vrot.lane.b32.xlu0 %v314_v3, %s1109_s12 }
  0x85   : > { %v317_v4 = vpop.permute.xlu0 %316 }
  0x86   : > { %v319_v5 = vsub.f32 %v314_v3, %v317_v4 }
  0x88   : > { %321 = vst.msk [vmem:[%s309_s15] sm:$0xff] %vm320_vm1, %v319_v5  ;;  %325 = vst.msk [vmem:[#allocation2 + $0x2] sm:$0xff] %vm320_vm1, %v319_v5 }
  0x8f   : > { %v348_v6 = vld [vmem:[#allocation2 + $0x1] sm:$0xff] }
  0x90   : > { %v333_v7 = vld [vmem:[#allocation2] sm:$0xff]  ;;  %353 = vperm.xlu1 %1098, %v348_v6  }
  0x91   : > { %337 = vperm.xlu0 %1097, %v333_v7   ;;  %v364_v8 = vld [vmem:[#allocation2 + $0x2] sm:$0xff] }
  0x92   : > { %v396_v9 = vld [vmem:[#allocation2 + $0x4] sm:$0xff] }
  0x93   : > { %v380_v10 = vld [vmem:[#allocation2 + $0x3] sm:$0xff] }
  0x94   : > { %369 = vperm.xlu1 %1098, %v364_v8  }
  0x95   : > { %401 = vperm.xlu0 %1097, %v396_v9  }
  0x98   : > { %385 = vperm.xlu1 %1098, %v380_v10  }
 0x10f   : > { %v354_v17 = vpop.permute.xlu1 %353 }
 0x110   : > { %v338_v19 = vpop.permute.xlu0 %337  ;;  %v362_v22 = vmul.f32 %v991_v16, %v354_v17 }
 0x111   : > { %v346_v20 = vmul.f32 %v989_v15, %v338_v19 }
 0x113   : > { %v347_v23 = vadd.f32 %v988_v18, %v346_v20  ;;  %v370_v24 = vpop.permute.xlu1 %369 }
 0x114   : > { %v378_v26 = vmul.f32 %v993_v21, %v370_v24  ;;  %v402_v29 = vpop.permute.xlu0 %401 }
 0x115   : > { %v363_v25 = vadd.f32 %v362_v22, %v347_v23  ;;  %v410_v33 = vmul.f32 %v997_v28, %v402_v29 }
 0x117   : > { %v386_v30 = vpop.permute.xlu1 %385  ;;  %v379_v31 = vadd.f32 %v378_v26, %v363_v25 }
 0x118   : > { %v394_v32 = vmul.f32 %v995_v27, %v386_v30 }
 0x11a   : > { %v395_v34 = vadd.f32 %v394_v32, %v379_v31 }
 0x11c   : > { %v411_v35 = vadd.f32 %v410_v33, %v395_v34 }
 0x11e   : > { %v412_v36 = vmax.f32 %v411_v35, 0.0 }
 0x120   : > { %414 = vst.msk [vmem:[#allocation2 + $0x2] sm:$0xff] %vm413_vm3, %v412_v36 }
 0x127   : > { %v422_v40 = vld [vmem:[#allocation2 + $0x1] sm:$0xff] }
 0x128   : > { %1034 = vmatmul.mubr.msk.f32.vlgmr.msra.gmra.mrb[0].mxu0 %vm413_vm3, %v422_v40  ;;  %v499_v44 = vld [vmem:[#allocation2 + $0x2] sm:$0xff] }
 0x129   : > { %1070 = vmatpush3.bf16.msra.mxu0 %v1069_v39  ;;  %1040 = vmatprep.mubr.msk.f32.mxu0 %vm1111_vm2, %v1108_v2  ;;  %v577_v45 = vld [vmem:[#allocation2 + $0x3] sm:$0xff] }
 0x12a   : > { %1071 = vmatprep.subr.bf16.mxu0 %v1110_v13 }
 0x130   : > { %1041 = vmatmul.mubr.msk.f32.vlgmr.msra.gmra.mrb[0].mxu0 %vm413_vm3, %v499_v44 }
 0x131   : > { %1073 = vmatpush3.bf16.msra.mxu0 %v1072_v43  ;;  %1047 = vmatprep.mubr.msk.f32.mxu0 %vm1111_vm2, %v1108_v2 }
 0x138   : > { %1048 = vmatmul.mubr.msk.f32.vlgmr.msra.gmra.mrb[0].mxu0 %vm413_vm3, %v577_v45 }
 0x20b   : > { %v650_v48 = vpop.f32.mrb[0].mxu0 }
 0x20c   : > { %v1074_v49 = vadd.f32 %v998_v47, %v650_v48  ;;  %v1049_v50 = vpop.f32.mrb[1].mxu0 }
 0x20e   : > { %v655_v51 = vmax.f32 %v1074_v49, 0.0 }
 0x210   : > { %657 = vst.msk [vmem:[#allocation2 + $0x2] sm:$0xff] %vm656_vm4, %v655_v51 }
 0x217   : > { %v665_v53 = vld [vmem:[#allocation2 + $0x1] sm:$0xff] }
 0x218   : > { %1053 = vmatmul.mubr.msk.f32.vlgmr.msra.gmra.mrb[0].mxu1 %vm656_vm4, %v665_v53  ;;  %v741_v55 = vld [vmem:[#allocation2 + $0x2] sm:$0xff] }
 0x219   : > { %1056 = vmatpush3.msra.mxu1 %v1008_v52  ;;  %1057 = vmatprep.mubr.msk.f32.mxu1 %vm1111_vm2, %v1108_v2  ;;  %v818_v56 = vld [vmem:[#allocation2 + $0x3] sm:$0xff] }
 0x21a   : > { %1060 = vmatprep.subr.mxu1 %v1108_v2 }
 0x220   : > { %1058 = vmatmul.mubr.msk.f32.vlgmr.msra.gmra.mrb[0].mxu1 %vm656_vm4, %v741_v55 }
 0x221   : > { %1061 = vmatpush3.msra.mxu1 %v1010_v54  ;;  %1062 = vmatprep.mubr.msk.f32.mxu1 %vm1111_vm2, %v1108_v2 }
 0x228   : > { %1063 = vmatmul.mubr.msk.f32.vlgmr.msra.gmra.mrb[0].mxu1 %vm656_vm4, %v818_v56 }
 0x2fb   : > { %v890_v58 = vpop.f32.mrb[0].mxu1 }
 0x2fc   : > { %v1075_v59 = vadd.f32 %v1006_v57, %v890_v58  ;;  %v1064_v60 = vpop.f32.mrb[1].mxu1 }
 0x2fe   : > { %895 = vst.msk [vmem:[%s313_s30] sm:$0xff] %vm320_vm1, %v1075_v59 }
 0x2ff PF: > { %s21_s29 = sadd.s32 1, %s1105_s29  }
 0x300   : > { %p18_p4 = scmp.ge.s32.totalorder %s21_s29, 4  }
 0x302   :  { %20 = sbr.rel (!%p18_p4) target bundleno = 3 (0x3), region = 98 }

</bundles_post_ra>
